<compile_context>
chip_gen: v6e
topology: v6e:2x2x1
jax: 0.10.0
libtpu: 0.0.40
codegen_flags: <defaults>
</compile_context>

<pallas_src>
import math
from functools import partial

import jax
import jax.numpy as jnp
from jax.experimental import pallas as pl
from jax.experimental.pallas import tpu as pltpu


def cnn_head_kernel(pic_ref, txt_ref, wp_ref, wt_ref, b_ref, logit_ref):
    """logit = pic @ W_pic + txt @ W_txt + b  (whole head folded on the host)."""
    f32, bf16 = jnp.float32, jnp.bfloat16
    pic = pic_ref[...].astype(bf16)   # in-kernel cast: free VPU work, keeps the
    txt = txt_ref[...].astype(bf16)   # HBM stream at the producer's dtype
    logit = (jnp.dot(pic, wp_ref[...], preferred_element_type=f32)
             + jnp.dot(txt, wt_ref[...], preferred_element_type=f32)
             + b_ref[...])
    logit_ref[...] = logit.astype(logit_ref.dtype)


def _rup(x, m):
    return ((x + m - 1) // m) * m


def prepare_params(params):
    """One-time (outside the serving path) fold of the entire affine head.

    SelfAttention over a length-1 sequence: softmax over one key is 1, so
    attn(x) == x @ wv + bv.  With no nonlinearity anywhere between img_fc,
    the attention, fc_temp and fc, the head collapses to a single affine map.
    Folded in f32; only the class dim is padded to a lane multiple; weights are
    cast to bf16 for the MXU, the bias stays f32.
    """
    f32, bf16 = jnp.float32, jnp.bfloat16
    wt_fold = params["wt_v"] + params["wv"] @ params["wt_a"]          # (E, E)
    bt_fold = params["bt"] + params["bv"] @ params["wt_a"]            # (1, E)

    w_pic = params["w_img"] @ wt_fold @ params["wf_v"]                # (Dv, C)
    w_txt = wt_fold @ params["wf_t"]                                  # (E,  C)
    b_all = (params["b_img"] @ wt_fold @ params["wf_v"]
             + bt_fold @ (params["wf_v"] + params["wf_t"])
             + params["bf"])                                          # (1,  C)

    c = params["bf"].shape[1]
    c_p = _rup(c, 128)                                  # lane-dense output
    pad_c = lambda a: jnp.pad(a, ((0, 0), (0, c_p - c)))
    return {
        "w_pic": pad_c(w_pic).astype(bf16),
        "w_txt": pad_c(w_txt).astype(bf16),
        "b_all": pad_c(b_all).astype(f32),
    }


@partial(jax.jit, static_argnames=("num_classes", "tile_n"))
def cnn_head(pic_feat, txt_feat, prepared, *, num_classes, tile_n=512):
    """pic_feat: (N, Dv) vgg(pic) outputs; txt_feat: (N, E) BERT pooler outputs
    (any float dtype; zero rows for empty content).  Returns (N, C) f32 logits."""
    f32 = jnp.float32
    N, dv = pic_feat.shape
    e = txt_feat.shape[1]
    c_p = prepared["b_all"].shape[1]

    # Batch tiling: one full-size block (no padding at all) when the batch fits
    # a single tile; otherwise the smallest multiple-of-8 tile that divides the
    # padded batch (minimal wasted tail rows, >=2 grid steps feeds both v7x TCs).
    if N <= tile_n:
        tn, g, n_p = N, 1, N
    else:
        g = pl.cdiv(N, tile_n)
        tn = _rup(pl.cdiv(N, g), 8)
        n_p = g * tn

    pic = pic_feat if n_p == N else jnp.pad(pic_feat, ((0, n_p - N), (0, 0)))
    txt = txt_feat if n_p == N else jnp.pad(txt_feat, ((0, n_p - N), (0, 0)))

    resident = lambda shape: pl.BlockSpec(shape, lambda i: (0, 0))

    logits = pl.pallas_call(
        cnn_head_kernel,
        out_shape=jax.ShapeDtypeStruct((n_p, c_p), f32),
        grid=(g,),
        in_specs=[
            pl.BlockSpec((tn, dv), lambda i: (i, 0)),   # pic tile (pipelined)
            pl.BlockSpec((tn, e), lambda i: (i, 0)),    # txt tile (pipelined)
            resident((dv, c_p)),                        # folded weights stay
            resident((e, c_p)),                         #   resident in VMEM
            resident((1, c_p)),
        ],
        out_specs=pl.BlockSpec((tn, c_p), lambda i: (i, 0)),
        compiler_params=pltpu.CompilerParams(
            dimension_semantics=("parallel",)),
    )(pic, txt, prepared["w_pic"], prepared["w_txt"], prepared["b_all"])

    return logits[:N, :num_classes]


def init_params(key, dv, e, c):
    """Deterministic parameter init.  Linear weights stored as (in, out), i.e.
    PyTorch's nn.Linear weight transposed, so math reads x @ W + b."""
    ks = jax.random.split(key, 12)
    s = lambda fan_in: 1.0 / math.sqrt(fan_in)
    u = lambda k, shp, b: jax.random.uniform(k, shp, jnp.float32, -b, b)
    return {
        "w_img": u(ks[0], (dv, e), s(dv)),
        "b_img": u(ks[1], (1, e), s(dv)),
        # SelfAttention projections (q/k only feed the dead softmax; they are
        # used by the f32 reference but cancel out of the folded kernel)
        "wq": u(ks[2], (e, e), s(e)), "bq": u(ks[3], (1, e), s(e)),
        "wk": u(ks[4], (e, e), s(e)), "bk": u(ks[5], (1, e), s(e)),
        "wv": u(ks[6], (e, e), s(e)), "bv": u(ks[7], (1, e), s(e)),
        # fc_temp: Linear(2E -> E); weight split into two (E, E) halves
        "wt_v": u(ks[8], (e, e), s(2 * e)),
        "wt_a": u(ks[9], (e, e), s(2 * e)),
        "bt": jnp.zeros((1, e), jnp.float32),
        # fc: Linear(2E -> C); weight split into two (E, C) halves
        "wf_v": u(ks[10], (e, c), s(2 * e)),
        "wf_t": u(ks[11], (e, c), s(2 * e)),
        "bf": jnp.zeros((1, c), jnp.float32),
    }


def reference(pic_feat, txt_feat, p):
    """Pure-JAX f32 reference of the module's forward pass (unfolded attention)."""
    v_mixed = pic_feat @ p["w_img"] + p["b_img"]
    t_mixed = txt_feat

    def attn(x):
        # x.unsqueeze(1): every row is its own length-1 sequence
        q = x @ p["wq"] + p["bq"]
        k = x @ p["wk"] + p["bk"]
        v = x @ p["wv"] + p["bv"]
        s = jnp.sum(q * k, axis=-1, keepdims=True) / math.sqrt(x.shape[-1])
        w = jax.nn.softmax(s[..., None], axis=-1)[..., 0]   # over 1 key -> 1
        return w * v

    v_out = v_mixed @ p["wt_v"] + attn(v_mixed) @ p["wt_a"] + p["bt"]
    t_out = t_mixed @ p["wt_v"] + attn(t_mixed) @ p["wt_a"] + p["bt"]
    return v_out @ p["wf_v"] + t_out @ p["wf_t"] + p["bf"]


if __name__ == "__main__":
    # Small shapes consistent with the module's forward:
    #   N  = number of drawings in the batch (len(drawing))
    #   Dv = VGG16 classifier output dim (1000 in the module; 120 here, small,
    #        non-multiple-of-128 to exercise the unpadded full-dim block path)
    #   E  = config.bert_embedding (768 in the module; 128 here, small)
    #   C  = num_classes
    N, Dv, E, C = 4, 120, 128, 10

    key = jax.random.PRNGKey(0)
    k_pic, k_txt, k_par = jax.random.split(key, 3)

    pic_feat = jax.random.normal(k_pic, (N, Dv), jnp.float32)   # vgg(pic) outputs
    txt_feat = jax.random.normal(k_txt, (N, E), jnp.float32)    # BERT pooler outputs
    # emulate the `len(content[i]) == 0` branch: zero text feature for item 2
    txt_feat = txt_feat.at[2].set(0.0)

    params = init_params(k_par, Dv, E, C)
    prepared = prepare_params(params)        # one-time host-side fold + pad + cast

    logits = jax.block_until_ready(
        cnn_head(pic_feat, txt_feat, prepared, num_classes=C))
    ref = reference(pic_feat, txt_feat, params)
    assert logits.shape == (N, C)
    # bf16 matmul inputs with f32 accumulation vs. a pure-f32 reference.
    assert jnp.allclose(logits, ref, atol=2e-2, rtol=2e-2), "mismatch vs reference"

    # Also exercise the multi-tile / padded-batch / parallel-grid path.
    N2 = 20
    k2a, k2b = jax.random.split(jax.random.PRNGKey(1))
    pic2 = jax.random.normal(k2a, (N2, Dv), jnp.float32)
    txt2 = jax.random.normal(k2b, (N2, E), jnp.float32)
    logits2 = jax.block_until_ready(
        cnn_head(pic2, txt2, prepared, num_classes=C, tile_n=8))
    ref2 = reference(pic2, txt2, params)
    assert logits2.shape == (N2, C)
    assert jnp.allclose(logits2, ref2, atol=2e-2, rtol=2e-2), "mismatch (tiled path)"

    print("KERNEL_OK")
</pallas_src>

<mosaic_0001>
module attributes {stable_mosaic.version = 11 : i64} {
  func.func @cnn_head_kernel(%arg0: i32, %arg1: memref<4x120xf32, #tpu.memory_space<vmem>>, %arg2: memref<4x128xf32, #tpu.memory_space<vmem>>, %arg3: memref<120x128xbf16, #tpu.memory_space<vmem>>, %arg4: memref<128x128xbf16, #tpu.memory_space<vmem>>, %arg5: memref<1x128xf32, #tpu.memory_space<vmem>>, %arg6: memref<4x128xf32, #tpu.memory_space<vmem>>) attributes {dimension_semantics = [#tpu.dimension_semantics<parallel>], iteration_bounds = array<i64: 1>, scalar_prefetch = 0 : i64, scratch_operands = 0 : i64, tpu.core_type = #tpu.core_type<tc>, window_params = [{transform_indices = @transform_0, window_bounds = array<i64: 4, 120>}, {transform_indices = @transform_1, window_bounds = array<i64: 4, 128>}, {pipeline_mode = #tpu.pipeline_mode<synchronous>, transform_indices = @transform_2, window_bounds = array<i64: 120, 128>}, {pipeline_mode = #tpu.pipeline_mode<synchronous>, transform_indices = @transform_3, window_bounds = array<i64: 128, 128>}, {pipeline_mode = #tpu.pipeline_mode<synchronous>, transform_indices = @transform_4, window_bounds = array<i64: 1, 128>}, {transform_indices = @transform_5, window_bounds = array<i64: 4, 128>}]} {
    %c0 = arith.constant 0 : index
    %c0_0 = arith.constant 0 : index
    %0 = vector.load %arg1[%c0, %c0_0] : memref<4x120xf32, #tpu.memory_space<vmem>>, vector<4x120xf32>
    %1 = arith.truncf %0 : vector<4x120xf32> to vector<4x120xbf16>
    %c0_1 = arith.constant 0 : index
    %c0_2 = arith.constant 0 : index
    %2 = vector.load %arg2[%c0_1, %c0_2] : memref<4x128xf32, #tpu.memory_space<vmem>>, vector<4x128xf32>
    %3 = arith.truncf %2 : vector<4x128xf32> to vector<4x128xbf16>
    %c0_3 = arith.constant 0 : index
    %c0_4 = arith.constant 0 : index
    %4 = vector.load %arg3[%c0_3, %c0_4] : memref<120x128xbf16, #tpu.memory_space<vmem>>, vector<120x128xbf16>
    %cst = arith.constant dense<0.000000e+00> : vector<4x128xf32>
    %5 = tpu.matmul %1, %4, %cst {dimension_numbers = #tpu.dot_dimension_numbers<[1], [0], [0], [1], [0, 0, 1, 1], [], []>} : vector<4x120xbf16>, vector<120x128xbf16>, vector<4x128xf32> -> vector<4x128xf32>
    %c0_5 = arith.constant 0 : index
    %c0_6 = arith.constant 0 : index
    %6 = vector.load %arg4[%c0_5, %c0_6] : memref<128x128xbf16, #tpu.memory_space<vmem>>, vector<128x128xbf16>
    %cst_7 = arith.constant dense<0.000000e+00> : vector<4x128xf32>
    %7 = tpu.matmul %3, %6, %cst_7 {dimension_numbers = #tpu.dot_dimension_numbers<[1], [0], [0], [1], [0, 0, 1, 1], [], []>} : vector<4x128xbf16>, vector<128x128xbf16>, vector<4x128xf32> -> vector<4x128xf32>
    %8 = arith.addf %5, %7 : vector<4x128xf32>
    %c0_8 = arith.constant 0 : index
    %c0_9 = arith.constant 0 : index
    %9 = vector.load %arg5[%c0_8, %c0_9] : memref<1x128xf32, #tpu.memory_space<vmem>>, vector<1x128xf32>
    %10 = vector.broadcast %9 : vector<1x128xf32> to vector<4x128xf32>
    %11 = arith.addf %8, %10 : vector<4x128xf32>
    %c0_10 = arith.constant 0 : index
    %c0_11 = arith.constant 0 : index
    %12 = vector.load %arg6[%c0_10, %c0_11] : memref<4x128xf32, #tpu.memory_space<vmem>>, vector<4x128xf32>
    tpu.vector_store %arg6[%c0_10, %c0_11], %11 {strides = array<i32>} : memref<4x128xf32, #tpu.memory_space<vmem>>, vector<4x128xf32>,
    return
  }
  func.func @transform_0(%arg0: i32) -> (i32, i32) {
    %c0_i32 = arith.constant 0 : i32
    %c0_i32_0 = arith.constant 0 : i32
    return %arg0, %c0_i32 : i32, i32
  }
  func.func @transform_1(%arg0: i32) -> (i32, i32) {
    %c0_i32 = arith.constant 0 : i32
    %c0_i32_0 = arith.constant 0 : i32
    return %arg0, %c0_i32 : i32, i32
  }
  func.func @transform_2(%arg0: i32) -> (i32, i32) {
    %c0_i32 = arith.constant 0 : i32
    %c0_i32_0 = arith.constant 0 : i32
    %c0_i32_1 = arith.constant 0 : i32
    return %c0_i32, %c0_i32_0 : i32, i32
  }
  func.func @transform_3(%arg0: i32) -> (i32, i32) {
    %c0_i32 = arith.constant 0 : i32
    %c0_i32_0 = arith.constant 0 : i32
    %c0_i32_1 = arith.constant 0 : i32
    return %c0_i32, %c0_i32_0 : i32, i32
  }
  func.func @transform_4(%arg0: i32) -> (i32, i32) {
    %c0_i32 = arith.constant 0 : i32
    %c0_i32_0 = arith.constant 0 : i32
    %c0_i32_1 = arith.constant 0 : i32
    return %c0_i32, %c0_i32_0 : i32, i32
  }
  func.func @transform_5(%arg0: i32) -> (i32, i32) {
    %c0_i32 = arith.constant 0 : i32
    %c0_i32_0 = arith.constant 0 : i32
    return %arg0, %c0_i32 : i32, i32
  }
}

</mosaic_0001>

<bundles_post_ra>
// kernel: cnn_head.1
= control target key start
LH: loop header
LB: loop body
LE: loop exit
PB: predicated region body
PF: predicated region fallthrough
CT: control target
= control target key end

     0   :  { %10 = vsyncpa [#allocation3], 0  ;;  %s581_s0 = inlined_call_operand.hbm [shape: f32[4,120], index: 0, kind: input, shape index: {}]   ;;  %s582_s1 = inlined_call_operand.hbm [shape: f32[4,128], index: 1, kind: input, shape index: {}]   ;;  %s583_s2 = inlined_call_operand.hbm [shape: bf16[120,128], index: 2, kind: input, shape index: {}]   ;;  %s584_s3 = inlined_call_operand.hbm [shape: bf16[128,128], index: 3, kind: input, shape index: {}]   ;;  %s585_s4 = inlined_call_operand.vmem [shape: f32[1,128], index: 4, kind: input, shape index: {}]   ;;  %s586_s5 = inlined_call_operand.hbm [shape: f32[4,128], index: 5, kind: output, shape index: {}]  }
   0x1   :  { %11 = vsyncpa [#allocation6], 0 }
   0x2   :  { %12 = vsyncpa [#allocation9], 0 }
   0x3   :  { %13 = vsyncpa [#allocation4], 0  ;;  %s524_s18 = smov [#allocation5]   ;;  %s525_s20 = smov [#allocation2]  }
   0x4   :  { %s30_s19 = sshll.u32 %s524_s18, 4  ;;  %s20_s21 = sshll.u32 %s525_s20, 4  ;;  %s31_s19 = int_to_ptr.vmem [resolvable:$true] %s30_s19  ;;  %s21_s21 = int_to_ptr.vmem [resolvable:$true] %s20_s21 }
   0x5   :  { %s424_s22 = scalar_lea.vmem %s31_s19, 64  ;;  %p429_p1 = scmp.lt.s32.totalorder %s31_s19, %s31_s19 }
   0x6   :  { %p425_p0 = scmp.ne.s32.totalorder %s31_s19, %s424_s22  ;;  %p430_p2 = scmp.lt.s32.totalorder %s424_s22, %s424_s22 }
   0x8   :  { %p431_p3 = por %p430_p2, %p429_p1 }
   0xa   :  { %p432_p4 = pnand %p431_p3, %p425_p0 }
   0xc   :  { %435 = shalt.err (!%p432_p4)
}
   0xd   :  { %33 = dma.hbm_to_vmem [thread:$0]  %s582_s1, 64, %s31_s19, [#allocation6]  }
   0xe   :  { %s444_s25 = scalar_lea.vmem %s21_s21, 64  ;;  %p449_p6 = scmp.lt.s32.totalorder %s21_s21, %s21_s21 }
   0xf   :  { %p445_p5 = scmp.ne.s32.totalorder %s21_s21, %s444_s25  ;;  %p450_p7 = scmp.lt.s32.totalorder %s444_s25, %s444_s25 }
  0x11   :  { %p451_p8 = por %p450_p7, %p449_p6 }
  0x13   :  { %p452_p9 = pnand %p451_p8, %p445_p5 }
  0x15   :  { %455 = shalt.err (!%p452_p9)
}
  0x16   :  { %23 = dma.hbm_to_vmem [thread:$0]  %s581_s0, 64, %s21_s21, [#allocation3]  }
  0x17   :  { %s526_s28 = smov [#allocation7]  }
  0x18   :  { %s39_s29 = sshll.u32 %s526_s28, 4  ;;  %s40_s29 = int_to_ptr.vmem [resolvable:$true] %s39_s29 }
  0x19   :  { %s464_s30 = scalar_lea.vmem %s40_s29, 960  ;;  %p469_p11 = scmp.lt.s32.totalorder %s40_s29, %s40_s29 }
  0x1a   :  { %p465_p10 = scmp.ne.s32.totalorder %s40_s29, %s464_s30  ;;  %p470_p12 = scmp.lt.s32.totalorder %s464_s30, %s464_s30 }
  0x1c   :  { %p471_p13 = por %p470_p12, %p469_p11 }
  0x1e   :  { %p472_p0 = pnand %p471_p13, %p465_p10 }
  0x20   :  { %475 = shalt.err (!%p472_p0)
}
  0x21   :  { %s527_s1 = smov 64   ;;  %s528_s6 = smov 4  }
  0x22   :  { %45 = dma.hbm_to_vmem [thread:$0]  %s583_s2, 960, %s40_s29, [#allocation6], %s527_s1, %s527_s1, %s528_s6  }
  0x23   :  { %s529_s9 = smov [#allocation8]  }
  0x24   :  { %s51_s10 = sshll.u32 %s529_s9, 4  ;;  %s52_s10 = int_to_ptr.vmem [resolvable:$true] %s51_s10 }
  0x25   :  { %s484_s0 = scalar_lea.vmem %s52_s10, 1024  ;;  %p489_p2 = scmp.lt.s32.totalorder %s52_s10, %s52_s10 }
  0x26   :  { %p485_p1 = scmp.ne.s32.totalorder %s52_s10, %s484_s0  ;;  %p490_p3 = scmp.lt.s32.totalorder %s484_s0, %s484_s0 }
  0x28   :  { %p491_p4 = por %p490_p3, %p489_p2 }
  0x2a   :  { %p492_p5 = pnand %p491_p4, %p485_p1 }
  0x2c   :  { %495 = shalt.err (!%p492_p5)
}
  0x2d   :  { %57 = dma.hbm_to_vmem [thread:$0]  %s584_s3, 1024, %s52_s10, [#allocation9], %s527_s1, %s527_s1, %s528_s6  }
  0x2e   :  { %516 = dma.done.wait [#allocation3], 64  }
  0x2f   :  { %517 = vsyncadd [#allocation3], 4294967232 }
  0x30   :  { %518 = dma.done.wait [#allocation6], 1024  }
  0x31   :  { %519 = vsyncadd [#allocation6], 4294966272 }
  0x32   :  { %520 = dma.done.wait [#allocation9], 1024  }
  0x33   :  { %521 = vsyncadd [#allocation9], 4294966272  ;;  %v530_v0 = vmov 0.0   ;;  %vm531_vm0 = vmmov 0   ;;  %v400_v1 = vld [vmem:[#allocation8 + $0x38] sm:$0xff]   ;;  %vm245_vm1 = vcmask 1043456  }
  0x34   :  { %351 = vmatprep.subr.bf16.mxu0 %v530_v0  ;;  %371 = vmatprep.subr.bf16.mxu1 %v530_v0  ;;  %v401_v2 = vld [vmem:[#allocation7 + $0x38] ss:$0 sps:$4 sm:$0xff]   ;;  %v402_v3 = vld [vmem:[#allocation8 + $0x30] sm:$0xff]   ;;  %v404_v6 = vld [vmem:[#allocation8 + $0x28] sm:$0xff]   ;;  %vm241_vm2 = vcmask 982016   ;;  %s532_s13 = smov [#allocation10]  }
  0x35   :  { %367 = vmatprep.mubr.msk.bf16.mxu0 %vm531_vm0, %v530_v0  ;;  %387 = vmatprep.mubr.msk.bf16.mxu1 %vm531_vm0, %v530_v0  ;;  %v247_v4 = vsel %vm245_vm1, %v401_v2, 0  ;;  %v403_v5 = vld [vmem:[#allocation7 + $0x30] sm:$0xff]   ;;  %v405_v7 = vld [vmem:[#allocation7 + $0x28] sm:$0xff]   ;;  %v406_v8 = vld [vmem:[#allocation8 + $0x20] sm:$0xff]   ;;  %s304_s14 = sshll.u32 %s532_s13, 4  ;;  %s305_s14 = int_to_ptr.vmem [resolvable:$true] %s304_s14 }
  0x36   :  { %352 = vmatpush3.bf16.msra.mxu0 %v400_v1  ;;  %372 = vmatpush3.bf16.msra.mxu1 %v247_v4  ;;  %v407_v9 = vld [vmem:[#allocation7 + $0x20] sm:$0xff]   ;;  %v408_v10 = vld [vmem:[#allocation8 + $0x18] sm:$0xff]   ;;  %v410_v12 = vld [vmem:[#allocation8 + $0x10] sm:$0xff]   ;;  %s496_s15 = scalar_lea.vmem %s305_s14, 64  ;;  %p501_p7 = scmp.lt.s32.totalorder %s305_s14, %s305_s14 }
  0x37   :  { %353 = vmatprep.subr.bf16.mxu0 %v530_v0  ;;  %373 = vmatprep.subr.bf16.mxu1 %v530_v0  ;;  %v409_v11 = vld [vmem:[#allocation7 + $0x18] sm:$0xff]   ;;  %v411_v13 = vld [vmem:[#allocation7 + $0x10] sm:$0xff]   ;;  %v412_v14 = vld [vmem:[#allocation8 + $0x8] sm:$0xff]   ;;  %p497_p6 = scmp.ne.s32.totalorder %s305_s14, %s496_s15  ;;  %p502_p8 = scmp.lt.s32.totalorder %s496_s15, %s496_s15 }
  0x38   :  { %v413_v15 = vld [vmem:[#allocation7 + $0x8] sm:$0xff]   ;;  %v414_v16 = vld [vmem:[#allocation8] sm:$0xff]   ;;  %v73_v19 = vld [vmem:[#allocation2] sm:$0xf] }
  0x39   :  { %v75_v17 = vld [vmem:[#allocation5] sm:$0xf]  ;;  %v415_v18 = vld [vmem:[#allocation7] sm:$0xff]   ;;  %v74_v21 = vpack.c.bf16 %v73_v19, %v73_v19  ;;  %v332_v24 = vld [vmem:[%s585_s4] ss:$0 sm:$0xff]  ;;  %p503_p9 = por %p502_p8, %p501_p7 }
  0x3a   :  { %354 = vmatpush3.bf16.msra.mxu0 %v402_v3  ;;  %374 = vmatpush3.bf16.msra.mxu1 %v403_v5  ;;  %v76_v20 = vpack.c.bf16 %v75_v17, %v75_v17 }
  0x3b   :  { %355 = vmatprep.subr.bf16.mxu0 %v530_v0  ;;  %375 = vmatprep.subr.bf16.mxu1 %v530_v0  ;;  %p504_p10 = pnand %p503_p9, %p497_p6 }
  0x3e   :  { %356 = vmatpush3.bf16.msra.mxu0 %v404_v6  ;;  %376 = vmatpush3.bf16.msra.mxu1 %v405_v7 }
  0x3f   :  { %357 = vmatprep.subr.bf16.mxu0 %v530_v0  ;;  %377 = vmatprep.subr.bf16.mxu1 %v530_v0 }
  0x42   :  { %358 = vmatpush3.bf16.msra.mxu0 %v406_v8  ;;  %378 = vmatpush3.bf16.msra.mxu1 %v407_v9 }
  0x43   :  { %359 = vmatprep.subr.bf16.mxu0 %v530_v0  ;;  %379 = vmatprep.subr.bf16.mxu1 %v530_v0 }
  0x46   :  { %360 = vmatpush3.bf16.msra.mxu0 %v408_v10  ;;  %380 = vmatpush3.bf16.msra.mxu1 %v409_v11 }
  0x47   :  { %361 = vmatprep.subr.bf16.mxu0 %v530_v0  ;;  %381 = vmatprep.subr.bf16.mxu1 %v530_v0 }
  0x4a   :  { %362 = vmatpush3.bf16.msra.mxu0 %v410_v12  ;;  %382 = vmatpush3.bf16.msra.mxu1 %v411_v13 }
  0x4b   :  { %363 = vmatprep.subr.bf16.mxu0 %v530_v0  ;;  %383 = vmatprep.subr.bf16.mxu1 %v530_v0 }
  0x4e   :  { %364 = vmatpush3.bf16.msra.mxu0 %v412_v14  ;;  %384 = vmatpush3.bf16.msra.mxu1 %v413_v15 }
  0x4f   :  { %365 = vmatprep.subr.bf16.mxu0 %v530_v0  ;;  %385 = vmatprep.subr.bf16.mxu1 %v530_v0 }
  0x52   :  { %366 = vmatpush3.bf16.msra.mxu0 %v414_v16  ;;  %386 = vmatpush3.bf16.msra.mxu1 %v415_v18 }
  0x55   :  { %368 = vmatmul.mubr.bf16.vlgmr.msra.gmra.mxu0 %v76_v20  ;;  %388 = vmatmul.mubr.msk.bf16.vlgmr.msra.gmra.mxu1 %vm241_vm2, %v74_v21 }
 0x115   :  { %v190_v22 = vpop.f32.mrf.mxu0  ;;  %v283_v23 = vpop.f32.mrf.mxu1 }
 0x116   :  { %v284_v26 = vadd.f32 %v283_v23, %v190_v22 }
 0x117   :  { %v369_v25 = vpop.f32.mrf.mxu0  ;;  %v389_v27 = vpop.f32.mrf.mxu1 }
 0x118   :  { %v296_v29 = vadd.f32 %v332_v24, %v284_v26 }
 0x119   :  { %v193_v28 = vpop.f32.mrf.mxu0  ;;  %v286_v30 = vpop.f32.mrf.mxu1 }
 0x11a   :  { %297 = vst [vmem:[#allocation10] sm:$0xf] %v296_v29 }
 0x11b   :  { %v370_v31 = vpop.f32.mrf.mxu0  ;;  %v390_v32 = vpop.f32.mrf.mxu1 }
 0x11c   :  { %507 = shalt.err (!%p504_p10)
}
 0x11d   :  { %307 = dma.vmem_to_hbm [thread:$0]  %s305_s14, 64, %s586_s5, [#allocation4]  }
 0x11e   :  { %522 = dma.done.wait [#allocation4], 64  }
 0x11f   :  { %523 = vsyncadd [#allocation4], 4294967232 }
 0x120   :  { %311 = vsyncpa [#allocation3], 1 }
 0x121   :  { %312 = vsyncpa [#allocation6], 1 }
 0x122   :  { %313 = vsyncpa [#allocation9], 1 }
 0x123   :  { %314 = vsyncpa [#allocation4], 1 }

</bundles_post_ra>
